<compile_context>
chip_gen: v7x
topology: tpu7x:2x2x1
jax: 0.10.0
libtpu: 0.0.40
codegen_flags: <defaults>
</compile_context>

<pallas_src>
import functools
import math

import jax
import jax.numpy as jnp
from jax import lax
from jax.experimental import pallas as pl
from jax.experimental.pallas import tpu as pltpu

_LANES = 128
_SUBLANES = 8
# ~4 MiB of *input* bytes per operand per block.
_TARGET_BLOCK_BYTES = 4 * 1024 * 1024
_VMEM_LIMIT_BYTES = 48 * 1024 * 1024


def _distance_loss_kernel(x_ref, t_ref, o_ref, acc_ref, *,
                          coord, tile_r, width, n_rows, n_blocks, blocks_per_core):
    """Accumulate per-point Euclidean distances over lane-dense (tile_r, width) blocks.

    x_ref, t_ref : (tile_r, width) VMEM blocks of the flattened coordinate stream
    o_ref        : (1, 8, 128) VMEM output slab (partial SUM for this grid-parallel slice)
    acc_ref      : (tile_r, width) f32 VMEM scratch accumulator (per-core)
    """
    c = pl.program_id(0)   # partial-sum index ("parallel"; one per TensorCore when sharded)
    i = pl.program_id(1)   # row-block index within this partial ("arbitrary")

    @pl.when(i == 0)
    def _():
        acc_ref[...] = jnp.zeros_like(acc_ref)

    x = x_ref[...].astype(jnp.float32)
    t = t_ref[...].astype(jnp.float32)
    diff = x - t
    sq = diff * diff

    # Sum the `coord` consecutive lanes of each point onto the point's first lane.
    # pltpu.roll runs on the XLU slot (free relative to the VPU ops above).
    paired = sq
    for j in range(1, coord):
        paired = paired + pltpu.roll(sq, shift=width - j, axis=1)

    blk = c * blocks_per_core + i            # logical (un-clamped) block index
    is_interior = blk < (n_blocks - 1)

    # Fast path (all interior blocks): no masking at all.  Lanes that are not the first
    # lane of a point hold finite cross-point sums of squares of real data; they are
    # dropped once in the epilogue, so the steady state is sub/mul/roll-add/sqrt/acc-add.
    # TODO(synk): jnp.sqrt still runs on all lanes although only 1/coord are kept;
    #             compacting valid lanes before the sqrt would cut EUP work if it binds.
    @pl.when(is_interior)
    def _():
        acc_ref[...] += jnp.sqrt(paired)

    # Edge path: the last (possibly ragged) block and clamped duplicate blocks may carry
    # garbage rows (stale VMEM / duplicate data) that must not reach the accumulator.
    @pl.when(jnp.logical_not(is_interior))
    def _():
        row = lax.broadcasted_iota(jnp.int32, paired.shape, 0)
        in_range = (blk * tile_r + row) < n_rows
        acc_ref[...] += jnp.sqrt(jnp.where(in_range, paired, 0.0))

    @pl.when(i == pl.num_programs(1) - 1)
    def _():
        # One-time masked reduction: keep only the first lane of each point.
        lane = lax.broadcasted_iota(jnp.int32, acc_ref.shape, 1)
        partial = jnp.sum(jnp.where(lane % coord == 0, acc_ref[...], 0.0))
        o_ref[...] = jnp.broadcast_to(partial, o_ref.shape)


def distance_loss(pred, target, *, block_bytes=_TARGET_BLOCK_BYTES):
    """Pallas implementation of DistanceLoss.forward(pred, target)."""
    assert pred.shape == target.shape
    coord = pred.shape[-1]
    n_points = math.prod(pred.shape[:-1])
    n_elems = n_points * coord

    x = pred.reshape(-1)
    t = target.reshape(-1)

    # ---- lane-dense repacking: flatten row-major (free) and view as (rows, width) ----
    # width is a multiple of both 128 lanes and `coord`, so points never straddle rows.
    base = (_LANES * coord) // math.gcd(_LANES, coord)      # lcm(128, coord)
    width = base
    for cand in (8 * base, 4 * base, 2 * base):
        if n_elems % cand == 0:
            width = cand
            break
    rows = n_elems // width
    n_main = rows * width

    # Tail (< width elements) that does not fill a lane-dense row: a handful of plain-jnp
    # ops in the wrapper (no padding pass over the full tensors).
    if n_main < n_elems:
        xt = x[n_main:].astype(jnp.float32).reshape(-1, coord)
        tt = t[n_main:].astype(jnp.float32).reshape(-1, coord)
        dt = xt - tt
        tail_sum = jnp.sum(jnp.sqrt(jnp.sum(dt * dt, axis=-1)))
    else:
        tail_sum = jnp.float32(0.0)

    if rows == 0:
        # Entire input fits in the tail (fewer elements than one lane-dense row).
        return tail_sum / jnp.float32(n_points)

    xm = x[:n_main].reshape(rows, width)
    tm = t[:n_main].reshape(rows, width)

    # ---- block sizing by bytes actually DMA'd (handles bf16 inputs correctly) ----
    in_bytes = xm.dtype.itemsize
    target_rows = max(_SUBLANES,
                      (block_bytes // (width * in_bytes)) // _SUBLANES * _SUBLANES)
    if rows <= target_rows:
        tile_r = rows                      # single full-extent block along rows
        n_blocks = 1
    else:
        tile_r = target_rows               # multiple of 8
        n_blocks = -(-rows // tile_r)      # last block may be ragged -> edge path in kernel

    # Two independent partial sums when there is enough work; each has its own scratch
    # accumulator and its own output block.  (At most one clamped duplicate block of DMA.)
    n_partials = 2 if n_blocks >= 2 else 1
    blocks_per_core = -(-n_blocks // n_partials)

    def in_map(c, i):
        # Clamp so the DMA never addresses past the last real block; clamped logical
        # indices are fully masked by the in-kernel edge path.
        return (jnp.minimum(c * blocks_per_core + i, n_blocks - 1), 0)

    kernel = functools.partial(
        _distance_loss_kernel,
        coord=coord, tile_r=tile_r, width=width,
        n_rows=rows, n_blocks=n_blocks, blocks_per_core=blocks_per_core)

    partials = pl.pallas_call(
        kernel,
        out_shape=jax.ShapeDtypeStruct((n_partials, _SUBLANES, _LANES), jnp.float32),
        grid_spec=pltpu.PrefetchScalarGridSpec(
            num_scalar_prefetch=0,
            grid=(n_partials, blocks_per_core),
            in_specs=[
                pl.BlockSpec((tile_r, width), in_map),
                pl.BlockSpec((tile_r, width), in_map),
            ],
            out_specs=pl.BlockSpec((1, _SUBLANES, _LANES), lambda c, i: (c, 0, 0)),
            scratch_shapes=[pltpu.VMEM((tile_r, width), jnp.float32)],
        ),
        compiler_params=pltpu.CompilerParams(
            dimension_semantics=("parallel", "arbitrary"),
            vmem_limit_bytes=_VMEM_LIMIT_BYTES,
        ),
    )(xm, tm)

    total = jnp.sum(partials[:, 0, 0]) + tail_sum
    return total / jnp.float32(n_points)


def _reference(pred, target):
    diff = pred.astype(jnp.float32) - target.astype(jnp.float32)
    return jnp.mean(jnp.sqrt(jnp.sum(diff * diff, axis=-1)))


if __name__ == "__main__":
    key = jax.random.PRNGKey(0)
    k1, k2, k3, k4, k5, k6, k7, k8 = jax.random.split(key, 8)

    # Primary small case: blob keypoint trajectories (batch=2, seq=8, keypoints=4, coords=2).
    pred = jax.random.normal(k1, (2, 8, 4, 2), dtype=jnp.float32)
    target = jax.random.normal(k2, (2, 8, 4, 2), dtype=jnp.float32)
    loss = distance_loss(pred, target)
    jax.block_until_ready(loss)
    assert jnp.allclose(loss, _reference(pred, target), atol=1e-5, rtol=1e-4), loss

    # Ragged case (flat length not a multiple of 128): exercises the jnp tail path.
    p2 = jax.random.normal(k3, (3, 7, 11, 2), dtype=jnp.float32)
    t2 = jax.random.normal(k4, (3, 7, 11, 2), dtype=jnp.float32)
    l2 = distance_loss(p2, t2)
    jax.block_until_ready(l2)
    assert jnp.allclose(l2, _reference(p2, t2), atol=1e-5, rtol=1e-4), l2

    # 3-D keypoints (coord=3): guards the roll-pairing / lane-mask for coord != 2.
    p3 = jax.random.normal(k5, (2, 4, 16, 3), dtype=jnp.float32)
    t3 = jax.random.normal(k6, (2, 4, 16, 3), dtype=jnp.float32)
    l3 = distance_loss(p3, t3)
    jax.block_until_ready(l3)
    assert jnp.allclose(l3, _reference(p3, t3), atol=1e-5, rtol=1e-4), l3

    # Larger case at the default block size: multi-block tiling, odd block count
    # (one clamped duplicate block), ragged last block, and the two-partial "parallel" axis.
    p4 = jax.random.normal(k7, (8, 128, 1200, 2), dtype=jnp.float32)
    t4 = jax.random.normal(k8, (8, 128, 1200, 2), dtype=jnp.float32)
    l4 = distance_loss(p4, t4)
    jax.block_until_ready(l4)
    assert jnp.allclose(l4, _reference(p4, t4), atol=1e-4, rtol=1e-3), l4

    print("KERNEL_OK")
</pallas_src>

<mosaic_0001>
module attributes {stable_mosaic.version = 11 : i64} {
  func.func @_distance_loss_kernel(%arg0: i32, %arg1: i32, %arg2: memref<1x128xf32, #tpu.memory_space<vmem>>, %arg3: memref<1x128xf32, #tpu.memory_space<vmem>>, %arg4: memref<1x8x128xf32, #tpu.memory_space<vmem>>, %arg5: memref<1x128xf32, #tpu.memory_space<vmem>>) attributes {dimension_semantics = [#tpu.dimension_semantics<parallel>, #tpu.dimension_semantics<arbitrary>], iteration_bounds = array<i64: 1, 1>, scalar_prefetch = 0 : i64, scratch_operands = 1 : i64, tpu.core_type = #tpu.core_type<tc>, window_params = [{transform_indices = @transform_0, window_bounds = array<i64: 1, 128>}, {transform_indices = @transform_1, window_bounds = array<i64: 1, 128>}, {transform_indices = @transform_2, window_bounds = array<i64: 1, 8, 128>}]} {
    %c0_i32 = arith.constant 0 : i32
    %0 = arith.cmpi eq, %arg1, %c0_i32 : i32
    %1 = arith.extui %0 : i1 to i32
    %c0_i32_0 = arith.constant 0 : i32
    %2 = arith.cmpi ne, %1, %c0_i32_0 : i32
    scf.if %2 {
      %cst = arith.constant 0.000000e+00 : f32
      %20 = vector.broadcast %cst : f32 to vector<1x128xf32>
      %c0_9 = arith.constant 0 : index
      %c0_10 = arith.constant 0 : index
      %21 = vector.load %arg5[%c0_9, %c0_10] : memref<1x128xf32, #tpu.memory_space<vmem>>, vector<1x128xf32>
      tpu.vector_store %arg5[%c0_9, %c0_10], %20 {strides = array<i32>} : memref<1x128xf32, #tpu.memory_space<vmem>>, vector<1x128xf32>,
    } else {
    }
    %c0 = arith.constant 0 : index
    %c0_1 = arith.constant 0 : index
    %3 = vector.load %arg2[%c0, %c0_1] : memref<1x128xf32, #tpu.memory_space<vmem>>, vector<1x128xf32>
    %c0_2 = arith.constant 0 : index
    %c0_3 = arith.constant 0 : index
    %4 = vector.load %arg3[%c0_2, %c0_3] : memref<1x128xf32, #tpu.memory_space<vmem>>, vector<1x128xf32>
    %5 = arith.subf %3, %4 : vector<1x128xf32>
    %6 = arith.mulf %5, %5 : vector<1x128xf32>
    %c127_i32 = arith.constant 127 : i32
    %7 = tpu.dynamic_rotate %6 by %c127_i32 dim 1 : vector<1x128xf32>, i32 -> vector<1x128xf32>
    %8 = arith.addf %6, %7 : vector<1x128xf32>
    %c1_i32 = arith.constant 1 : i32
    %9 = arith.muli %arg0, %c1_i32 : i32
    %10 = arith.addi %9, %arg1 : i32
    %c0_i32_4 = arith.constant 0 : i32
    %11 = arith.cmpi slt, %10, %c0_i32_4 : i32
    %12 = arith.extui %11 : i1 to i32
    %c0_i32_5 = arith.constant 0 : i32
    %13 = arith.cmpi ne, %12, %c0_i32_5 : i32
    scf.if %13 {
      %c0_9 = arith.constant 0 : index
      %c0_10 = arith.constant 0 : index
      %20 = vector.load %arg5[%c0_9, %c0_10] : memref<1x128xf32, #tpu.memory_space<vmem>>, vector<1x128xf32>
      %21 = math.sqrt %8 : vector<1x128xf32>
      %22 = arith.addf %20, %21 : vector<1x128xf32>
      %c0_11 = arith.constant 0 : index
      %c0_12 = arith.constant 0 : index
      %23 = vector.load %arg5[%c0_11, %c0_12] : memref<1x128xf32, #tpu.memory_space<vmem>>, vector<1x128xf32>
      tpu.vector_store %arg5[%c0_11, %c0_12], %22 {strides = array<i32>} : memref<1x128xf32, #tpu.memory_space<vmem>>, vector<1x128xf32>,
    } else {
    }
    %true = arith.constant true
    %14 = arith.xori %11, %true : i1
    %15 = arith.extui %14 : i1 to i32
    %c0_i32_6 = arith.constant 0 : i32
    %16 = arith.cmpi ne, %15, %c0_i32_6 : i32
    scf.if %16 {
      %20 = tpu.iota {dimensions = array<i32: 0>} : vector<1x128xi32>
      %c1_i32_9 = arith.constant 1 : i32
      %21 = arith.muli %10, %c1_i32_9 : i32
      %22 = vector.broadcast %21 : i32 to vector<1x128xi32>
      %23 = arith.addi %22, %20 : vector<1x128xi32>
      %c1_i32_10 = arith.constant 1 : i32
      %24 = vector.broadcast %c1_i32_10 : i32 to vector<1x128xi32>
      %25 = arith.cmpi slt, %23, %24 : vector<1x128xi32>
      %c0_11 = arith.constant 0 : index
      %c0_12 = arith.constant 0 : index
      %26 = vector.load %arg5[%c0_11, %c0_12] : memref<1x128xf32, #tpu.memory_space<vmem>>, vector<1x128xf32>
      %cst = arith.constant 0.000000e+00 : f32
      %27 = vector.broadcast %cst : f32 to vector<1x128xf32>
      %28 = arith.select %25, %8, %27 : vector<1x128xi1>, vector<1x128xf32>
      %29 = math.sqrt %28 : vector<1x128xf32>
      %30 = arith.addf %26, %29 : vector<1x128xf32>
      %c0_13 = arith.constant 0 : index
      %c0_14 = arith.constant 0 : index
      %31 = vector.load %arg5[%c0_13, %c0_14] : memref<1x128xf32, #tpu.memory_space<vmem>>, vector<1x128xf32>
      tpu.vector_store %arg5[%c0_13, %c0_14], %30 {strides = array<i32>} : memref<1x128xf32, #tpu.memory_space<vmem>>, vector<1x128xf32>,
    } else {
    }
    %c0_i32_7 = arith.constant 0 : i32
    %17 = arith.cmpi eq, %arg1, %c0_i32_7 : i32
    %18 = arith.extui %17 : i1 to i32
    %c0_i32_8 = arith.constant 0 : i32
    %19 = arith.cmpi ne, %18, %c0_i32_8 : i32
    scf.if %19 {
      %20 = tpu.iota {dimensions = array<i32: 1>} : vector<1x128xi32>
      %c2_i32 = arith.constant 2 : i32
      %c0_i32_9 = arith.constant 0 : i32
      %21 = arith.cmpi eq, %c2_i32, %c0_i32_9 : i32
      %c1_i32_10 = arith.constant 1 : i32
      %22 = arith.select %21, %c1_i32_10, %c2_i32 : i32
      %23 = vector.broadcast %22 : i32 to vector<1x128xi32>
      %24 = arith.remsi %20, %23 : vector<1x128xi32>
      %c0_i32_11 = arith.constant 0 : i32
      %25 = vector.broadcast %c0_i32_11 : i32 to vector<1x128xi32>
      %26 = arith.cmpi ne, %24, %25 : vector<1x128xi32>
      %c0_i32_12 = arith.constant 0 : i32
      %27 = vector.broadcast %c0_i32_12 : i32 to vector<1x128xi32>
      %28 = arith.cmpi slt, %24, %27 : vector<1x128xi32>
      %c0_i32_13 = arith.constant 0 : i32
      %29 = arith.cmpi slt, %22, %c0_i32_13 : i32
      %30 = vector.broadcast %29 : i1 to vector<1x128xi1>
      %31 = vector.broadcast %30 : vector<1x128xi1> to vector<1x128xi1>
      %32 = arith.xori %28, %31 : vector<1x128xi1>
      %33 = arith.andi %32, %26 : vector<1x128xi1>
      %34 = vector.broadcast %22 : i32 to vector<1x128xi32>
      %35 = arith.addi %24, %34 : vector<1x128xi32>
      %36 = arith.select %33, %35, %24 : vector<1x128xi1>, vector<1x128xi32>
      %c0_i32_14 = arith.constant 0 : i32
      %37 = vector.broadcast %c0_i32_14 : i32 to vector<1x128xi32>
      %38 = arith.cmpi eq, %36, %37 : vector<1x128xi32>
      %c0_15 = arith.constant 0 : index
      %c0_16 = arith.constant 0 : index
      %39 = vector.load %arg5[%c0_15, %c0_16] : memref<1x128xf32, #tpu.memory_space<vmem>>, vector<1x128xf32>
      %cst = arith.constant 0.000000e+00 : f32
      %40 = vector.broadcast %cst : f32 to vector<1x128xf32>
      %41 = arith.select %38, %39, %40 : vector<1x128xi1>, vector<1x128xf32>
      %42 = vector.shape_cast %41 : vector<1x128xf32> to vector<1x1x128xf32>
      %cst_17 = arith.constant dense<0.000000e+00> : vector<1xf32>
      %43 = vector.multi_reduction <add>, %42, %cst_17 [1, 2] : vector<1x1x128xf32> to vector<1xf32>
      %44 = vector.shape_cast %43 : vector<1xf32> to vector<1x1x1xf32>
      %45 = vector.extract %44[0, 0, 0] : f32 from vector<1x1x1xf32>
      %46 = vector.broadcast %45 : f32 to vector<1x8x128xf32>
      %c0_18 = arith.constant 0 : index
      %c0_19 = arith.constant 0 : index
      %c0_20 = arith.constant 0 : index
      %47 = vector.load %arg4[%c0_18, %c0_19, %c0_20] : memref<1x8x128xf32, #tpu.memory_space<vmem>>, vector<1x8x128xf32>
      tpu.vector_store %arg4[%c0_18, %c0_19, %c0_20], %46 {strides = array<i32>} : memref<1x8x128xf32, #tpu.memory_space<vmem>>, vector<1x8x128xf32>,
    } else {
    }
    return
  }
  func.func @transform_0(%arg0: i32, %arg1: i32) -> (i32, i32) {
    %c1_i32 = arith.constant 1 : i32
    %0 = arith.muli %arg0, %c1_i32 : i32
    %1 = arith.addi %0, %arg1 : i32
    %c0_i32 = arith.constant 0 : i32
    %2 = arith.minsi %1, %c0_i32 : i32
    %c0_i32_0 = arith.constant 0 : i32
    %c0_i32_1 = arith.constant 0 : i32
    return %2, %c0_i32_0 : i32, i32
  }
  func.func @transform_1(%arg0: i32, %arg1: i32) -> (i32, i32) {
    %c1_i32 = arith.constant 1 : i32
    %0 = arith.muli %arg0, %c1_i32 : i32
    %1 = arith.addi %0, %arg1 : i32
    %c0_i32 = arith.constant 0 : i32
    %2 = arith.minsi %1, %c0_i32 : i32
    %c0_i32_0 = arith.constant 0 : i32
    %c0_i32_1 = arith.constant 0 : i32
    return %2, %c0_i32_0 : i32, i32
  }
  func.func @transform_2(%arg0: i32, %arg1: i32) -> (i32, i32, i32) {
    %c0_i32 = arith.constant 0 : i32
    %c0_i32_0 = arith.constant 0 : i32
    %c0_i32_1 = arith.constant 0 : i32
    return %arg0, %c0_i32, %c0_i32_0 : i32, i32, i32
  }
}

</mosaic_0001>

<bundles_post_ra>
// kernel: tpu_custom_call.1
= control target key start
LH: loop header
LB: loop body
LE: loop exit
PB: predicated region body
PF: predicated region fallthrough
CT: control target
= control target key end

     0   :  { %7 = vsyncpa [#allocation4], 0  ;;  %s258_s0 = inlined_call_operand.hbm [shape: f32[1,128], index: 0, kind: input, shape index: {}]   ;;  %s259_s1 = inlined_call_operand.vmem [shape: f32[1,128], index: 1, kind: input, shape index: {}]   ;;  %s260_s2 = inlined_call_operand.hbm [shape: f32[1,8,128], index: 2, kind: output, shape index: {}]  }
   0x1   :  { %8 = vsyncpa [#allocation5], 0  ;;  %s212_s9 = smov [#allocation3]   ;;  %s164_s13 = scalar_lea.hbm %s258_s0, 16 }
   0x2   :  { %s20_s10 = sshll.u32 %s212_s9, 4  ;;  %p165_p0 = scmp.ne.s32.totalorder %s258_s0, %s164_s13  ;;  %s21_s10 = int_to_ptr.vmem [resolvable:$true] %s20_s10 }
   0x3   :  { %p168_p1 = scmp.lt.u32.totalorder %s164_s13, %s258_s0 }
   0x5   :  { %p170_p2 = pnand %p168_p1, %p165_p0 }
   0x7   :  { %173 = shalt.err (!%p170_p2)
}
   0x8   :  { %s174_s18 = scalar_lea.vmem %s21_s10, 16  ;;  %s178_s19 = scalar_lea.vmem %s21_s10, 32 }
   0x9   :  { %p175_p3 = scmp.ne.s32.totalorder %s21_s10, %s174_s18  ;;  %p179_p4 = scmp.lt.s32.totalorder %s21_s10, %s21_s10 }
   0xa   :  { %p180_p5 = scmp.lt.s32.totalorder %s178_s19, %s174_s18 }
   0xc   :  { %p181_p6 = por %p180_p5, %p179_p4 }
   0xe   :  { %p182_p7 = pnand %p181_p6, %p175_p3 }
  0x10   :  { %185 = shalt.err (!%p182_p7)
}
  0x11   :  { %23 = dma.hbm_to_vmem [thread:$0]  %s258_s0, 16, %s21_s10, [#allocation4]  }
  0x12   :  { %208 = dma.done.wait [#allocation4], 16  }
  0x13   :  { %209 = vsyncadd [#allocation4], 4294967280  ;;  %v213_v0 = vmov 0.0   ;;  %v61_v1 = vld [vmem:[#allocation3] sm:$0x1]  ;;  %s214_s24 = smov 127   ;;  %v87_v5 = vlaneseq }
  0x14   :  { %60 = vst [vmem:[#allocation2] sm:$0x1] %v213_v0  ;;  %v62_v2 = vld [vmem:[%s259_s1] sm:$0x1]  ;;  %vm123_vm4 = vcmask 1040384   ;;  %s215_s0 = smov [#allocation6]  }
  0x15   :  { %v63_v3 = vsub.f32 %v61_v1, %v62_v2  ;;  %v88_v6 = vshrl.u32 %v87_v5, 7  ;;  %v107_v16 = vand.u32 127, %v87_v5  ;;  %s142_s1 = sshll.u32 %s215_s0, 4  ;;  %s143_s1 = int_to_ptr.vmem [resolvable:$true] %s142_s1 }
  0x16   :  { %s186_s26 = scalar_lea.vmem %s143_s1, 128  ;;  %p191_p9 = scmp.lt.s32.totalorder %s143_s1, %s143_s1 }
  0x17   :  { %v64_v4 = vmul.f32 %v63_v3, %v63_v3  ;;  %vm91_vm0 = vcmp.lt.s32.totalorder %v88_v6, 1  ;;  %v112_v18 = vand.u32 1, %v107_v16  ;;  %p187_p8 = scmp.ne.s32.totalorder %s143_s1, %s186_s26  ;;  %p192_p10 = scmp.lt.s32.totalorder %s186_s26, %s186_s26 }
  0x19   :  { %65 = vrot.lane.b32.xlu0 %v64_v4, %s214_s24  ;;  %vm120_vm3 = vcmp.eq.s32.totalorder %v112_v18, 0  ;;  %p193_p11 = por %p192_p10, %p191_p9 }
  0x1b   :  { %v92_v12 = vld [vmem:[#allocation2] sm:$0x1]  ;;  %p194_p12 = pnand %p193_p11, %p187_p8 }
  0x8b   :  { %v66_v7 = vpop.permute.xlu0 %65 }
  0x8c   :  { %v67_v8 = vadd.f32 %v66_v7, %v64_v4 }
  0x8e   :  { %v93_v9 = vsel %vm91_vm0, %v67_v8, 0.0 }
  0x8f   :  { %162 = vrsqrt.f32 %v93_v9  ;;  %vm96_vm1 = vcmp.eq.f32.partialorder %v93_v9, inf  ;;  %v99_v13 = vand.u32 2147483648, %v93_v9  ;;  %vm98_vm2 = vcmp.eq.f32.partialorder %v93_v9, 0.0 }
  0x99   :  { %v163_v10 = vpop.eup %162 }
  0x9a   :  { %v95_v11 = vmul.f32 %v163_v10, %v93_v9 }
  0x9c   :  { %v97_v14 = vsel %vm96_vm1, %v93_v9, %v95_v11 }
  0x9d   :  { %v100_v15 = vsel %vm98_vm2, %v99_v13, %v97_v14 }
  0x9e   :  { %v101_v17 = vadd.f32 %v100_v15, %v92_v12 }
  0xa0   :  { %102 = vst [vmem:[#allocation2] sm:$0x1] %v101_v17 }
  0xa7   :  { %v121_v19 = vld [vmem:[#allocation2] sm:$0x1] }
  0xa8   :  { %v122_v20 = vsel %vm120_vm3, %v121_v19, 0.0 }
  0xa9   :  { %v124_v21 = vsel %vm123_vm4, %v122_v20, 0.0 }
  0xaa   :  { %125 = vadd.xlane.f32.xlu0 %v124_v21 }
 0x137   :  { %v126_v22 = vpop.xlane.xlu0 %125 }
 0x138   :  { %v127_v23 = vrot.slane %v126_v22, 4 }
 0x13a   :  { %v128_v24 = vadd.f32 %v127_v23, %v126_v22 }
 0x13c   :  { %v129_v25 = vrot.slane %v128_v24, 2 }
 0x13e   :  { %v130_v26 = vadd.f32 %v129_v25, %v128_v24 }
 0x140   :  { %v131_v27 = vrot.slane %v130_v26, 1 }
 0x142   :  { %v132_v28 = vadd.f32 %v131_v27, %v130_v26 }
 0x144   :  { %156 = vpush %v132_v28 }
 0x175   :  { %s157_s25 = spop %156 }
 0x176   :  { %v134_v29 = vstv %s157_s25 }
 0x177   :  { %135 = vst [vmem:[#allocation6] sm:$0xff] %v134_v29 }
 0x178   :  { %197 = shalt.err (!%p194_p12)
}
 0x179   :  { %s198_s29 = scalar_lea.hbm %s260_s2, 128 }
 0x17a   :  { %p199_p13 = scmp.ne.s32.totalorder %s260_s2, %s198_s29  ;;  %p202_p0 = scmp.lt.u32.totalorder %s198_s29, %s260_s2 }
 0x17c   :  { %p204_p1 = pnand %p202_p0, %p199_p13 }
 0x17e   :  { %207 = shalt.err (!%p204_p1)
}
 0x17f   :  { %145 = dma.vmem_to_hbm [thread:$0]  %s143_s1, 128, %s260_s2, [#allocation5]  }
 0x180   :  { %210 = dma.done.wait [#allocation5], 128  }
 0x181   :  { %211 = vsyncadd [#allocation5], 4294967168 }
 0x182   :  { %149 = vsyncpa [#allocation4], 1 }
 0x183   :  { %150 = vsyncpa [#allocation5], 1 }

</bundles_post_ra>
